<compile_context>
chip_gen: v7x
topology: tpu7x:2x2x1
jax: 0.10.0
libtpu: 0.0.40
codegen_flags: <defaults>
</compile_context>

<pallas_src>
import jax
import jax.numpy as jnp
from jax.experimental import pallas as pl
from jax.experimental.pallas import tpu as pltpu

LANE = 128          # lane width (fast axis)
MAX_SUB_TILE = 256  # sublanes per grid step  -> up to 256*128 = 32768 batch / step

# Packed-parameter layout (flat f32[26]):
#   [0:3]   fc0.weight (1,3) row-major      [3]     fc0.bias (1,)
#   [4:7]   fc1.weight (3,1) row-major      [7:10]  fc1.bias (3,)
#   [10:19] fc2.weight (3,3) row-major      [19:22] fc2.bias (3,)
#   [22:25] fc3.weight (1,3) row-major      [25]    fc3.bias (1,)


def _mlp_kernel(w_ref, x_ref, o_ref):
    """x_ref: (3, TS, 128) VMEM, o_ref: (TS, 128) VMEM, w_ref: SMEM f32[26].

    Each x_ref[f] is a fully dense (TS, 128) slab: one batch element per
    (sublane, lane) slot.  Everything below is VPU broadcast-FMA + max.
    """
    x0 = x_ref[0]
    x1 = x_ref[1]
    x2 = x_ref[2]

    # fc0 (no activation): scalar output per batch element
    h = x0 * w_ref[0] + x1 * w_ref[1] + x2 * w_ref[2] + w_ref[3]

    # fc1 + ReLU   (weight is (3,1): one scalar per output unit)
    a0 = jnp.maximum(h * w_ref[4] + w_ref[7], 0.0)
    a1 = jnp.maximum(h * w_ref[5] + w_ref[8], 0.0)
    a2 = jnp.maximum(h * w_ref[6] + w_ref[9], 0.0)

    # fc2 + ReLU   (weight (3,3) row-major: W[j,i] at 10 + 3*j + i)
    c0 = jnp.maximum(a0 * w_ref[10] + a1 * w_ref[11] + a2 * w_ref[12] + w_ref[19], 0.0)
    c1 = jnp.maximum(a0 * w_ref[13] + a1 * w_ref[14] + a2 * w_ref[15] + w_ref[20], 0.0)
    c2 = jnp.maximum(a0 * w_ref[16] + a1 * w_ref[17] + a2 * w_ref[18] + w_ref[21], 0.0)

    # fc3 (no activation)
    o_ref[...] = c0 * w_ref[22] + c1 * w_ref[23] + c2 * w_ref[24] + w_ref[25]


def _round_up(n, m):
    return ((n + m - 1) // m) * m


def pack_params(params):
    """Flatten the 4 (weight, bias) pairs into one f32[26] array (do once)."""
    (w0, b0), (w1, b1), (w2, b2), (w3, b3) = params
    return jnp.concatenate([
        w0.reshape(-1), b0.reshape(-1),
        w1.reshape(-1), b1.reshape(-1),
        w2.reshape(-1), b2.reshape(-1),
        w3.reshape(-1), b3.reshape(-1),
    ]).astype(jnp.float32)


def my_model_forward(x, packed_params):
    """x: (B, 3) float32.  Returns (B, 1) float32, matching the torch forward."""
    B = x.shape[0]

    # Batch laid out on (sublanes, lanes): element b -> (b // 128, b % 128).
    rows = pl.cdiv(max(B, 1), LANE)                 # sublane rows needed
    ts = min(MAX_SUB_TILE, _round_up(rows, 8))      # sublanes per grid step
    sp = _round_up(rows, ts)                        # total sublane rows (padded)
    bp = sp * LANE                                  # padded batch
    num_tiles = sp // ts

    # Lane/sublane-dense input slab: (3 features, Sp sublane-rows, 128 lanes).
    x_t = (jnp.zeros((3, bp), jnp.float32)
           .at[:, :B].set(x.astype(jnp.float32).T)
           .reshape(3, sp, LANE))

    out = pl.pallas_call(
        _mlp_kernel,
        out_shape=jax.ShapeDtypeStruct((sp, LANE), jnp.float32),
        grid_spec=pltpu.PrefetchScalarGridSpec(
            num_scalar_prefetch=0,
            grid=(num_tiles,),
            in_specs=[
                pl.BlockSpec(memory_space=pltpu.MemorySpace.SMEM),   # packed params
                pl.BlockSpec((3, ts, LANE), lambda i: (0, i, 0)),    # x tile
            ],
            out_specs=pl.BlockSpec((ts, LANE), lambda i: (i, 0)),    # dense out
        ),
        compiler_params=pltpu.CompilerParams(
            dimension_semantics=("parallel",)),
    )(packed_params, x_t)

    return out.reshape(bp)[:B].reshape(B, 1)


def init_params(key):
    """Deterministic init matching the torch layer shapes:
       fc0: (1,3)+(1,), fc1: (3,1)+(3,), fc2: (3,3)+(3,), fc3: (1,3)+(1,)."""
    shapes = [(1, 3), (3, 1), (3, 3), (1, 3)]
    params = []
    for out_f, in_f in shapes:
        key, kw, kb = jax.random.split(key, 3)
        bound = 1.0 / jnp.sqrt(in_f)
        w = jax.random.uniform(kw, (out_f, in_f), jnp.float32, -bound, bound)
        b = jax.random.uniform(kb, (out_f,), jnp.float32, -bound, bound)
        params.append((w, b))
    return params


def reference_forward(x, params):
    """Pure-JAX reference replicating the torch forward exactly."""
    (w0, b0), (w1, b1), (w2, b2), (w3, b3) = params
    h = x @ w0.T + b0
    h = jnp.maximum(h @ w1.T + b1, 0.0)
    h = jnp.maximum(h @ w2.T + b2, 0.0)
    return h @ w3.T + b3


if __name__ == "__main__":
    key = jax.random.PRNGKey(0)
    kx, kx2, kp = jax.random.split(key, 3)

    params = init_params(kp)
    packed = pack_params(params)

    # Small batch (single tile, heavy padding path).
    B = 8
    x = jax.random.normal(kx, (B, 3), jnp.float32)
    out = jax.block_until_ready(my_model_forward(x, packed))
    ref = reference_forward(x, params)
    assert out.shape == (B, 1), out.shape
    assert jnp.allclose(out, ref, atol=1e-5, rtol=1e-5), (out, ref)

    # Larger batch exercising sublane padding (2500 -> 3072 padded, 1 tile).
    B2 = 2500
    x2 = jax.random.normal(kx2, (B2, 3), jnp.float32)
    out2 = jax.block_until_ready(my_model_forward(x2, packed))
    ref2 = reference_forward(x2, params)
    assert out2.shape == (B2, 1), out2.shape
    assert jnp.allclose(out2, ref2, atol=1e-5, rtol=1e-5)

    print("KERNEL_OK")
</pallas_src>

<mosaic_0001>
module attributes {stable_mosaic.version = 11 : i64} {
  func.func @_mlp_kernel(%arg0: i32, %arg1: memref<26xf32, #tpu.memory_space<smem>>, %arg2: memref<3x8x128xf32, #tpu.memory_space<vmem>>, %arg3: memref<8x128xf32, #tpu.memory_space<vmem>>) attributes {dimension_semantics = [#tpu.dimension_semantics<parallel>], iteration_bounds = array<i64: 1>, scalar_prefetch = 0 : i64, scratch_operands = 0 : i64, tpu.core_type = #tpu.core_type<tc>, window_params = [{transform_indices = @transform_0, window_bounds = array<i64: 26>}, {transform_indices = @transform_1, window_bounds = array<i64: 3, 8, 128>}, {transform_indices = @transform_2, window_bounds = array<i64: 8, 128>}]} {
    %c0 = arith.constant 0 : index
    %c0_0 = arith.constant 0 : index
    %c0_1 = arith.constant 0 : index
    %0 = vector.load %arg2[%c0, %c0_0, %c0_1] : memref<3x8x128xf32, #tpu.memory_space<vmem>>, vector<1x8x128xf32>
    %1 = vector.shape_cast %0 : vector<1x8x128xf32> to vector<8x128xf32>
    %c1 = arith.constant 1 : index
    %c0_2 = arith.constant 0 : index
    %c0_3 = arith.constant 0 : index
    %2 = vector.load %arg2[%c1, %c0_2, %c0_3] : memref<3x8x128xf32, #tpu.memory_space<vmem>>, vector<1x8x128xf32>
    %3 = vector.shape_cast %2 : vector<1x8x128xf32> to vector<8x128xf32>
    %c2 = arith.constant 2 : index
    %c0_4 = arith.constant 0 : index
    %c0_5 = arith.constant 0 : index
    %4 = vector.load %arg2[%c2, %c0_4, %c0_5] : memref<3x8x128xf32, #tpu.memory_space<vmem>>, vector<1x8x128xf32>
    %5 = vector.shape_cast %4 : vector<1x8x128xf32> to vector<8x128xf32>
    %c0_6 = arith.constant 0 : index
    %6 = memref.load %arg1[%c0_6] : memref<26xf32, #tpu.memory_space<smem>>
    %7 = vector.broadcast %6 : f32 to vector<8x128xf32>
    %8 = arith.mulf %1, %7 : vector<8x128xf32>
    %c1_7 = arith.constant 1 : index
    %9 = memref.load %arg1[%c1_7] : memref<26xf32, #tpu.memory_space<smem>>
    %10 = vector.broadcast %9 : f32 to vector<8x128xf32>
    %11 = arith.mulf %3, %10 : vector<8x128xf32>
    %12 = arith.addf %8, %11 : vector<8x128xf32>
    %c2_8 = arith.constant 2 : index
    %13 = memref.load %arg1[%c2_8] : memref<26xf32, #tpu.memory_space<smem>>
    %14 = vector.broadcast %13 : f32 to vector<8x128xf32>
    %15 = arith.mulf %5, %14 : vector<8x128xf32>
    %16 = arith.addf %12, %15 : vector<8x128xf32>
    %c3 = arith.constant 3 : index
    %17 = memref.load %arg1[%c3] : memref<26xf32, #tpu.memory_space<smem>>
    %18 = vector.broadcast %17 : f32 to vector<8x128xf32>
    %19 = arith.addf %16, %18 : vector<8x128xf32>
    %c4 = arith.constant 4 : index
    %20 = memref.load %arg1[%c4] : memref<26xf32, #tpu.memory_space<smem>>
    %21 = vector.broadcast %20 : f32 to vector<8x128xf32>
    %22 = arith.mulf %19, %21 : vector<8x128xf32>
    %c7 = arith.constant 7 : index
    %23 = memref.load %arg1[%c7] : memref<26xf32, #tpu.memory_space<smem>>
    %24 = vector.broadcast %23 : f32 to vector<8x128xf32>
    %25 = arith.addf %22, %24 : vector<8x128xf32>
    %cst = arith.constant 0.000000e+00 : f32
    %26 = vector.broadcast %cst : f32 to vector<8x128xf32>
    %27 = arith.maximumf %25, %26 : vector<8x128xf32>
    %c5 = arith.constant 5 : index
    %28 = memref.load %arg1[%c5] : memref<26xf32, #tpu.memory_space<smem>>
    %29 = vector.broadcast %28 : f32 to vector<8x128xf32>
    %30 = arith.mulf %19, %29 : vector<8x128xf32>
    %c8 = arith.constant 8 : index
    %31 = memref.load %arg1[%c8] : memref<26xf32, #tpu.memory_space<smem>>
    %32 = vector.broadcast %31 : f32 to vector<8x128xf32>
    %33 = arith.addf %30, %32 : vector<8x128xf32>
    %cst_9 = arith.constant 0.000000e+00 : f32
    %34 = vector.broadcast %cst_9 : f32 to vector<8x128xf32>
    %35 = arith.maximumf %33, %34 : vector<8x128xf32>
    %c6 = arith.constant 6 : index
    %36 = memref.load %arg1[%c6] : memref<26xf32, #tpu.memory_space<smem>>
    %37 = vector.broadcast %36 : f32 to vector<8x128xf32>
    %38 = arith.mulf %19, %37 : vector<8x128xf32>
    %c9 = arith.constant 9 : index
    %39 = memref.load %arg1[%c9] : memref<26xf32, #tpu.memory_space<smem>>
    %40 = vector.broadcast %39 : f32 to vector<8x128xf32>
    %41 = arith.addf %38, %40 : vector<8x128xf32>
    %cst_10 = arith.constant 0.000000e+00 : f32
    %42 = vector.broadcast %cst_10 : f32 to vector<8x128xf32>
    %43 = arith.maximumf %41, %42 : vector<8x128xf32>
    %c10 = arith.constant 10 : index
    %44 = memref.load %arg1[%c10] : memref<26xf32, #tpu.memory_space<smem>>
    %45 = vector.broadcast %44 : f32 to vector<8x128xf32>
    %46 = arith.mulf %27, %45 : vector<8x128xf32>
    %c11 = arith.constant 11 : index
    %47 = memref.load %arg1[%c11] : memref<26xf32, #tpu.memory_space<smem>>
    %48 = vector.broadcast %47 : f32 to vector<8x128xf32>
    %49 = arith.mulf %35, %48 : vector<8x128xf32>
    %50 = arith.addf %46, %49 : vector<8x128xf32>
    %c12 = arith.constant 12 : index
    %51 = memref.load %arg1[%c12] : memref<26xf32, #tpu.memory_space<smem>>
    %52 = vector.broadcast %51 : f32 to vector<8x128xf32>
    %53 = arith.mulf %43, %52 : vector<8x128xf32>
    %54 = arith.addf %50, %53 : vector<8x128xf32>
    %c19 = arith.constant 19 : index
    %55 = memref.load %arg1[%c19] : memref<26xf32, #tpu.memory_space<smem>>
    %56 = vector.broadcast %55 : f32 to vector<8x128xf32>
    %57 = arith.addf %54, %56 : vector<8x128xf32>
    %cst_11 = arith.constant 0.000000e+00 : f32
    %58 = vector.broadcast %cst_11 : f32 to vector<8x128xf32>
    %59 = arith.maximumf %57, %58 : vector<8x128xf32>
    %c13 = arith.constant 13 : index
    %60 = memref.load %arg1[%c13] : memref<26xf32, #tpu.memory_space<smem>>
    %61 = vector.broadcast %60 : f32 to vector<8x128xf32>
    %62 = arith.mulf %27, %61 : vector<8x128xf32>
    %c14 = arith.constant 14 : index
    %63 = memref.load %arg1[%c14] : memref<26xf32, #tpu.memory_space<smem>>
    %64 = vector.broadcast %63 : f32 to vector<8x128xf32>
    %65 = arith.mulf %35, %64 : vector<8x128xf32>
    %66 = arith.addf %62, %65 : vector<8x128xf32>
    %c15 = arith.constant 15 : index
    %67 = memref.load %arg1[%c15] : memref<26xf32, #tpu.memory_space<smem>>
    %68 = vector.broadcast %67 : f32 to vector<8x128xf32>
    %69 = arith.mulf %43, %68 : vector<8x128xf32>
    %70 = arith.addf %66, %69 : vector<8x128xf32>
    %c20 = arith.constant 20 : index
    %71 = memref.load %arg1[%c20] : memref<26xf32, #tpu.memory_space<smem>>
    %72 = vector.broadcast %71 : f32 to vector<8x128xf32>
    %73 = arith.addf %70, %72 : vector<8x128xf32>
    %cst_12 = arith.constant 0.000000e+00 : f32
    %74 = vector.broadcast %cst_12 : f32 to vector<8x128xf32>
    %75 = arith.maximumf %73, %74 : vector<8x128xf32>
    %c16 = arith.constant 16 : index
    %76 = memref.load %arg1[%c16] : memref<26xf32, #tpu.memory_space<smem>>
    %77 = vector.broadcast %76 : f32 to vector<8x128xf32>
    %78 = arith.mulf %27, %77 : vector<8x128xf32>
    %c17 = arith.constant 17 : index
    %79 = memref.load %arg1[%c17] : memref<26xf32, #tpu.memory_space<smem>>
    %80 = vector.broadcast %79 : f32 to vector<8x128xf32>
    %81 = arith.mulf %35, %80 : vector<8x128xf32>
    %82 = arith.addf %78, %81 : vector<8x128xf32>
    %c18 = arith.constant 18 : index
    %83 = memref.load %arg1[%c18] : memref<26xf32, #tpu.memory_space<smem>>
    %84 = vector.broadcast %83 : f32 to vector<8x128xf32>
    %85 = arith.mulf %43, %84 : vector<8x128xf32>
    %86 = arith.addf %82, %85 : vector<8x128xf32>
    %c21 = arith.constant 21 : index
    %87 = memref.load %arg1[%c21] : memref<26xf32, #tpu.memory_space<smem>>
    %88 = vector.broadcast %87 : f32 to vector<8x128xf32>
    %89 = arith.addf %86, %88 : vector<8x128xf32>
    %cst_13 = arith.constant 0.000000e+00 : f32
    %90 = vector.broadcast %cst_13 : f32 to vector<8x128xf32>
    %91 = arith.maximumf %89, %90 : vector<8x128xf32>
    %c22 = arith.constant 22 : index
    %92 = memref.load %arg1[%c22] : memref<26xf32, #tpu.memory_space<smem>>
    %93 = vector.broadcast %92 : f32 to vector<8x128xf32>
    %94 = arith.mulf %59, %93 : vector<8x128xf32>
    %c23 = arith.constant 23 : index
    %95 = memref.load %arg1[%c23] : memref<26xf32, #tpu.memory_space<smem>>
    %96 = vector.broadcast %95 : f32 to vector<8x128xf32>
    %97 = arith.mulf %75, %96 : vector<8x128xf32>
    %98 = arith.addf %94, %97 : vector<8x128xf32>
    %c24 = arith.constant 24 : index
    %99 = memref.load %arg1[%c24] : memref<26xf32, #tpu.memory_space<smem>>
    %100 = vector.broadcast %99 : f32 to vector<8x128xf32>
    %101 = arith.mulf %91, %100 : vector<8x128xf32>
    %102 = arith.addf %98, %101 : vector<8x128xf32>
    %c25 = arith.constant 25 : index
    %103 = memref.load %arg1[%c25] : memref<26xf32, #tpu.memory_space<smem>>
    %104 = vector.broadcast %103 : f32 to vector<8x128xf32>
    %105 = arith.addf %102, %104 : vector<8x128xf32>
    %c0_14 = arith.constant 0 : index
    %c0_15 = arith.constant 0 : index
    %106 = vector.load %arg3[%c0_14, %c0_15] : memref<8x128xf32, #tpu.memory_space<vmem>>, vector<8x128xf32>
    tpu.vector_store %arg3[%c0_14, %c0_15], %105 {strides = array<i32>} : memref<8x128xf32, #tpu.memory_space<vmem>>, vector<8x128xf32>,
    return
  }
  func.func @transform_0(%arg0: i32) -> i32 {
    %c0_i32 = arith.constant 0 : i32
    %c0_i32_0 = arith.constant 0 : i32
    return %c0_i32 : i32
  }
  func.func @transform_1(%arg0: i32) -> (i32, i32, i32) {
    %c0_i32 = arith.constant 0 : i32
    %c0_i32_0 = arith.constant 0 : i32
    %c0_i32_1 = arith.constant 0 : i32
    return %c0_i32, %arg0, %c0_i32_0 : i32, i32, i32
  }
  func.func @transform_2(%arg0: i32) -> (i32, i32) {
    %c0_i32 = arith.constant 0 : i32
    %c0_i32_0 = arith.constant 0 : i32
    return %arg0, %c0_i32 : i32, i32
  }
}

</mosaic_0001>

<bundles_post_ra>
// kernel: tpu_custom_call.1
= control target key start
LH: loop header
LB: loop body
LE: loop exit
PB: predicated region body
PF: predicated region fallthrough
CT: control target
= control target key end

     0   :  { %7 = vsyncpa [#allocation5], 0  ;;  %s353_s0 = inlined_call_operand.hbm [shape: f32[26], index: 0, kind: input, shape index: {}]   ;;  %s354_s1 = inlined_call_operand.hbm [shape: f32[3,8,128], index: 1, kind: input, shape index: {}]   ;;  %s355_s2 = inlined_call_operand.hbm [shape: f32[8,128], index: 2, kind: output, shape index: {}]  }
   0x1   :  { %8 = vsyncpa [#allocation3], 0 }
   0x2   :  { %9 = vsyncpa [#allocation4], 0  ;;  %s183_s11 = scalar_lea.hbm %s353_s0, 16 }
   0x3   :  { %p184_p0 = scmp.ne.s32.totalorder %s353_s0, %s183_s11  ;;  %p187_p1 = scmp.lt.u32.totalorder %s183_s11, %s353_s0 }
   0x5   :  { %p189_p2 = pnand %p187_p1, %p184_p0 }
   0x7   :  { %192 = shalt.err (!%p189_p2)
}
   0x8   :  { %s243_s16 = smov [#allocation2]   ;;  %s244_s19 = smov [#allocation6]  }
   0x9   :  { %17 = dma.hbm_to_smem %s353_s0, 16, %s243_s16, [#allocation5]  }
   0xa   :  { %s23_s20 = sshll.u32 %s244_s19, 4  ;;  %s193_s23 = scalar_lea.hbm %s354_s1, 384  ;;  %s24_s20 = int_to_ptr.vmem [resolvable:$true] %s23_s20 }
   0xb   :  { %p194_p3 = scmp.ne.s32.totalorder %s354_s1, %s193_s23  ;;  %p197_p4 = scmp.lt.u32.totalorder %s193_s23, %s354_s1 }
   0xd   :  { %p199_p5 = pnand %p197_p4, %p194_p3 }
   0xf   :  { %202 = shalt.err (!%p199_p5)
}
  0x10   :  { %s203_s28 = scalar_lea.vmem %s24_s20, 384  ;;  %p208_p7 = scmp.lt.s32.totalorder %s24_s20, %s24_s20 }
  0x11   :  { %p204_p6 = scmp.ne.s32.totalorder %s24_s20, %s203_s28  ;;  %p209_p8 = scmp.lt.s32.totalorder %s203_s28, %s203_s28 }
  0x13   :  { %p210_p9 = por %p209_p8, %p208_p7 }
  0x15   :  { %p211_p10 = pnand %p210_p9, %p204_p6 }
  0x17   :  { %214 = shalt.err (!%p211_p10)
}
  0x18   :  { %s245_s0 = smov 128   ;;  %s246_s29 = smov 8  }
  0x19   :  { %29 = dma.hbm_to_vmem [thread:$0]  %s354_s1, 384, %s24_s20, [#allocation3], %s245_s0, %s245_s0, %s246_s29  }
  0x1a   :  { %237 = dma.done.wait [#allocation5], 16  }
  0x1b   :  { %238 = vsyncadd [#allocation5], 4294967280 }
  0x1c   :  { %239 = dma.done.wait [#allocation3], 384  }
  0x1d   :  { %240 = vsyncadd [#allocation3], 4294966912 }
  0x1e   :  { %36 = sfence }
  0x1f   :  { %s42_s4 = sld [smem:[#allocation2]]  ;;  %s153_s5 = sld [smem:[#allocation2 + $0x1]]  ;;  %v37_v0 = vld [vmem:[#allocation6] sm:$0xff]  ;;  %v39_v1 = vld [vmem:[#allocation6 + $0x8] sm:$0xff]  ;;  %v41_v2 = vld [vmem:[#allocation6 + $0x10] sm:$0xff] }
  0x20   :  { %s154_s6 = sld [smem:[#allocation2 + $0x2]]  ;;  %s287_s7 = sld [smem:[#allocation2 + $0x3]] }
  0x21   :  { %s289_s8 = sld [smem:[#allocation2 + $0x4]]  ;;  %s291_s9 = sld [smem:[#allocation2 + $0x5]] }
  0x22   :  { %s293_s10 = sld [smem:[#allocation2 + $0x6]]  ;;  %s295_s1 = sld [smem:[#allocation2 + $0x7]] }
  0x23   :  { %s159_s11 = sld [smem:[#allocation2 + $0x8]]  ;;  %s161_s12 = sld [smem:[#allocation2 + $0x9]] }
  0x24   :  { %s297_s13 = sld [smem:[#allocation2 + $0xa]]  ;;  %s299_s14 = sld [smem:[#allocation2 + $0xb]] }
  0x25   :  { %v43_v3 = vstv %s42_s4  ;;  %v46_v5 = vstv %s153_s5  ;;  %s301_s15 = sld [smem:[#allocation2 + $0xc]]  ;;  %s303_s16 = sld [smem:[#allocation2 + $0xd]] }
  0x26   :  { %v44_v4 = vmul.f32 %v43_v3, %v37_v0  ;;  %v50_v6 = vstv %s154_s6  ;;  %v47_v7 = vmul.f32 %v46_v5, %v39_v1  ;;  %s305_s17 = sld [smem:[#allocation2 + $0xe]]  ;;  %v54_v10 = vstv %s287_s7  ;;  %s308_s18 = sld [smem:[#allocation2 + $0xf]] }
  0x27   :  { %v51_v8 = vmul.f32 %v50_v6, %v41_v2  ;;  %s310_s19 = sld [smem:[#allocation2 + $0x10]]  ;;  %s312_s20 = sld [smem:[#allocation2 + $0x11]]  ;;  %v57_v12 = vstv %s289_s8  ;;  %v64_v13 = vstv %s291_s9 }
  0x28   :  { %v48_v9 = vadd.f32 %v47_v7, %v44_v4  ;;  %v71_v14 = vstv %s293_s10  ;;  %s317_s21 = sld [smem:[#allocation2 + $0x12]]  ;;  %v60_v16 = vstv %s295_s1  ;;  %s322_s22 = sld [smem:[#allocation2 + $0x13]] }
  0x29   :  { %v67_v17 = vstv %s159_s11  ;;  %v74_v18 = vstv %s161_s12  ;;  %s325_s23 = sld [smem:[#allocation2 + $0x14]]  ;;  %s327_s24 = sld [smem:[#allocation2 + $0x15]] }
  0x2a   :  { %v52_v11 = vadd.f32 %v51_v8, %v48_v9  ;;  %v78_v22 = vstv %s297_s13  ;;  %v81_v23 = vstv %s299_s14  ;;  %s335_s25 = sld [smem:[#allocation2 + $0x16]]  ;;  %s175_s26 = sld [smem:[#allocation2 + $0x17]] }
  0x2b   :  { %v85_v27 = vstv %s301_s15  ;;  %v93_v28 = vstv %s303_s16  ;;  %s176_s27 = sld [smem:[#allocation2 + $0x18]]  ;;  %s177_s28 = sld [smem:[#allocation2 + $0x19]] }
  0x2c   :  { %v55_v15 = vadd.f32 %v54_v10, %v52_v11  ;;  %v96_v29 = vstv %s305_s17  ;;  %v100_v30 = vstv %s308_s18  ;;  %s247_s0 = smov [#allocation7]  }
  0x2d   :  { %v108_v31 = vstv %s310_s19  ;;  %v111_v35 = vstv %s312_s20  ;;  %s143_s29 = sshll.u32 %s247_s0, 4  ;;  %s144_s29 = int_to_ptr.vmem [resolvable:$true] %s143_s29 }
  0x2e   :  { %v58_v19 = vmul.f32 %v57_v12, %v55_v15  ;;  %v65_v20 = vmul.f32 %v64_v13, %v55_v15  ;;  %v72_v21 = vmul.f32 %v71_v14, %v55_v15  ;;  %v115_v36 = vstv %s317_s21  ;;  %s215_s30 = scalar_lea.vmem %s144_s29, 128  ;;  %p220_p12 = scmp.lt.s32.totalorder %s144_s29, %s144_s29 }
  0x2f   :  { %v89_v47 = vstv %s322_s22  ;;  %v104_v51 = vstv %s325_s23  ;;  %v119_v52 = vstv %s327_s24  ;;  %p216_p11 = scmp.ne.s32.totalorder %s144_s29, %s215_s30  ;;  %p221_p13 = scmp.lt.s32.totalorder %s215_s30, %s215_s30 }
  0x30   :  { %v61_v24 = vadd.f32 %v60_v16, %v58_v19  ;;  %v68_v25 = vadd.f32 %v67_v17, %v65_v20  ;;  %v75_v26 = vadd.f32 %v74_v18, %v72_v21  ;;  %v123_v58 = vstv %s335_s25 }
  0x31   :  { %v126_v60 = vstv %s175_s26  ;;  %v130_v61 = vstv %s176_s27  ;;  %v134_v4 = vstv %s177_s28  ;;  %p222_p0 = por %p221_p13, %p220_p12 }
  0x32   :  { %v62_v32 = vmax.f32 %v61_v24, 0.0  ;;  %v69_v33 = vmax.f32 %v68_v25, 0.0  ;;  %v76_v34 = vmax.f32 %v75_v26, 0.0 }
  0x33   :  { %p223_p1 = pnand %p222_p0, %p216_p11 }
  0x34   :  { %v79_v37 = vmul.f32 %v78_v22, %v62_v32  ;;  %v82_v38 = vmul.f32 %v81_v23, %v69_v33  ;;  %v86_v39 = vmul.f32 %v85_v27, %v76_v34  ;;  %v94_v40 = vmul.f32 %v93_v28, %v62_v32 }
  0x35   :  { %v97_v41 = vmul.f32 %v96_v29, %v69_v33  ;;  %v101_v42 = vmul.f32 %v100_v30, %v76_v34  ;;  %v109_v43 = vmul.f32 %v108_v31, %v62_v32  ;;  %v112_v44 = vmul.f32 %v111_v35, %v69_v33 }
  0x36   :  { %v83_v45 = vadd.f32 %v82_v38, %v79_v37  ;;  %v116_v46 = vmul.f32 %v115_v36, %v76_v34 }
  0x37   :  { %v98_v48 = vadd.f32 %v97_v41, %v94_v40  ;;  %v113_v49 = vadd.f32 %v112_v44, %v109_v43 }
  0x38   :  { %v87_v50 = vadd.f32 %v86_v39, %v83_v45 }
  0x39   :  { %v102_v53 = vadd.f32 %v101_v42, %v98_v48  ;;  %v117_v54 = vadd.f32 %v116_v46, %v113_v49 }
  0x3a   :  { %v90_v55 = vadd.f32 %v89_v47, %v87_v50 }
  0x3b   :  { %v105_v56 = vadd.f32 %v104_v51, %v102_v53  ;;  %v120_v57 = vadd.f32 %v119_v52, %v117_v54 }
  0x3c   :  { %v91_v59 = vmax.f32 %v90_v55, 0.0 }
  0x3d   :  { %v106_v62 = vmax.f32 %v105_v56, 0.0  ;;  %v121_v63 = vmax.f32 %v120_v57, 0.0 }
  0x3e   :  { %v124_v0 = vmul.f32 %v123_v58, %v91_v59 }
  0x3f   :  { %v127_v1 = vmul.f32 %v126_v60, %v106_v62  ;;  %v131_v2 = vmul.f32 %v130_v61, %v121_v63 }
  0x41   :  { %v128_v3 = vadd.f32 %v127_v1, %v124_v0 }
  0x43   :  { %v132_v5 = vadd.f32 %v131_v2, %v128_v3 }
  0x45   :  { %v135_v6 = vadd.f32 %v134_v4, %v132_v5 }
  0x47   :  { %136 = vst [vmem:[#allocation7] sm:$0xff] %v135_v6 }
  0x48   :  { %226 = shalt.err (!%p223_p1)
}
  0x49   :  { %s227_s5 = scalar_lea.hbm %s355_s2, 128 }
  0x4a   :  { %p228_p2 = scmp.ne.s32.totalorder %s355_s2, %s227_s5  ;;  %p231_p3 = scmp.lt.u32.totalorder %s227_s5, %s355_s2 }
  0x4c   :  { %p233_p4 = pnand %p231_p3, %p228_p2 }
  0x4e   :  { %236 = shalt.err (!%p233_p4)
}
  0x4f   :  { %146 = dma.vmem_to_hbm [thread:$0]  %s144_s29, 128, %s355_s2, [#allocation4]  }
  0x50   :  { %241 = dma.done.wait [#allocation4], 128  }
  0x51   :  { %242 = vsyncadd [#allocation4], 4294967168 }
  0x52   :  { %150 = vsyncpa [#allocation3], 1 }
  0x53   :  { %151 = vsyncpa [#allocation4], 1 }
  0x54   :  { %152 = vsyncpa [#allocation5], 1 }

</bundles_post_ra>
